<compile_context>
chip_gen: v7x
topology: tpu7x:2x2x1
jax: 0.10.0
libtpu: 0.0.40
codegen_flags: <defaults>
</compile_context>

<pallas_src>
import math

import jax
import jax.numpy as jnp
from jax.experimental import pallas as pl
from jax.experimental.pallas import tpu as pltpu

_LANE = 128       # lane width (last dim)
_SUBLANE = 16     # sublane alignment safe for both f32 (8) and bf16 (16) packing


def _round_up(x, m):
    return (x + m - 1) // m * m


def _cdiv(a, b):
    return -(-a // b)


def _pad2d(a, rows, cols):
    pr, pc = rows - a.shape[0], cols - a.shape[1]
    if pr == 0 and pc == 0:
        return a
    return jnp.pad(a, ((0, pr), (0, pc)))


def _vmem_capacity_bytes():
    """Generation-aware VMEM capacity (v5e/v6e: 128 MiB, v7x: 64 MiB per TC)."""
    try:
        info = pltpu.get_tpu_info()
        for attr in ("vmem_capacity_bytes", "vmem_bytes", "vmem_size_bytes"):
            v = getattr(info, attr, None)
            if v:
                return int(v)
    except Exception:
        pass
    return 64 << 20  # conservative default = v7x per-TensorCore


def _mlp_kernel(x_ref, w1_ref, b1_ref, w2_ref, b2_ref, o_ref, h_ref):
    # Layer 1 runs once per batch tile (output-feature tile j == 0); the bf16
    # hidden activation is kept in VMEM scratch and reused for every j.
    @pl.when(pl.program_id(1) == 0)
    def _():
        h = jnp.dot(x_ref[...], w1_ref[...], preferred_element_type=jnp.float32)
        h_ref[...] = jnp.maximum(h + b1_ref[...], 0.0).astype(h_ref.dtype)  # bias/ReLU in f32

    # Layer 2: relu(h @ W2 + b2) for this output-feature tile.
    o = jnp.dot(h_ref[...], w2_ref[...], preferred_element_type=jnp.float32)
    o_ref[...] = jnp.maximum(o + b2_ref[...], 0.0).astype(o_ref.dtype)


def mlp_pallas(x, w1, b1, w2, b2):
    """x: [B, D_in] f32; w1: [D_in, H]; b1: [1, H]; w2: [H, D_out]; b2: [1, D_out]."""
    batch, d_in = x.shape
    h_dim = w1.shape[1]
    d_out = w2.shape[1]
    out_dtype = x.dtype

    # Lane-dense padded hidden/output feature dims (MXU / vst friendly).
    # d_in stays unpadded: full-extent blocks for x's last dim and W1's rows.
    h_p = _round_up(h_dim, _LANE)
    d_out_p = _round_up(d_out, _LANE)

    cap = _vmem_capacity_bytes()
    budget = int(0.85 * cap)
    big_vmem = cap >= (96 << 20)           # v5e / v6e (128 MiB) vs v7x (64 MiB/TC)

    # ---- batch tile: balanced so last-tile padding stays < one tile --------
    tb_max = 1024 if big_vmem else 512
    hid_cap = (16 << 20) if big_vmem else (6 << 20)   # cap on f32 hidden temp
    while tb_max > _SUBLANE and tb_max * h_p * 4 > hid_cap:
        tb_max //= 2
    tb_max = max(tb_max, _SUBLANE)
    nb = _cdiv(batch, tb_max)
    tb = _round_up(_cdiv(batch, nb), _SUBLANE)
    batch_p = nb * tb                                  # >= batch

    # ---- output-feature tile: W2 resident if it fits, else streamed --------
    x_bytes = 2 * tb * d_in * 2                        # bf16 x, double-buffered
    hid_bytes = tb * h_p * (2 + 4)                     # bf16 scratch + f32 temp
    w1_bytes = 2 * d_in * h_p * 2                      # worst case (fallback = 2 bufs)
    fixed = x_bytes + hid_bytes + w1_bytes + 2 * (h_p + d_out_p) * 4

    tn = d_out_p
    while tn > _LANE and fixed + 2 * h_p * tn * 2 + 2 * tb * tn * 4 > budget:
        tn = max(_LANE, _round_up(tn // 2, _LANE))
    nj = _cdiv(d_out_p, tn)
    d_out_p = nj * tn
    weights_resident = nj == 1
    # TODO(synk): also tile d_in (K) with an f32 accumulator + pl.when
    # init/finalize for layers where W1 alone overflows per-core VMEM.

    vmem_need = fixed + 2 * h_p * tn * 2 + 2 * tb * tn * 4
    vmem_limit = int(min(cap, max(vmem_need + vmem_need // 4 + (2 << 20), 8 << 20)))

    # ---- host-side prep: bf16 activations/weights, zero padding ------------
    # Zero padding is exact: padded hidden cols are relu(0+0)=0 and contribute
    # nothing to the second matmul; padded rows/output cols are sliced off.
    x_p = x.astype(jnp.bfloat16)
    if batch_p != batch:
        x_p = jnp.pad(x_p, ((0, batch_p - batch), (0, 0)))
    w1_p = _pad2d(w1, d_in, h_p).astype(jnp.bfloat16)
    b1_p = _pad2d(b1, 1, h_p).astype(jnp.float32)
    w2_p = _pad2d(w2, h_p, d_out_p).astype(jnp.bfloat16)
    b2_p = _pad2d(b2, 1, d_out_p).astype(jnp.float32)

    def call(single_buffer_weights):
        res = (dict(pipeline_mode=pl.Buffered(1))
               if single_buffer_weights else {})
        if weights_resident:
            w2_spec = pl.BlockSpec((h_p, tn), lambda i, j: (0, 0), **res)
            b2_spec = pl.BlockSpec((1, tn), lambda i, j: (0, 0), **res)
        else:
            w2_spec = pl.BlockSpec((h_p, tn), lambda i, j: (0, j))
            b2_spec = pl.BlockSpec((1, tn), lambda i, j: (0, j))
        return pl.pallas_call(
            _mlp_kernel,
            out_shape=jax.ShapeDtypeStruct((batch_p, d_out_p), out_dtype),
            grid=(nb, nj),
            in_specs=[
                pl.BlockSpec((tb, d_in), lambda i, j: (i, 0)),          # x (bf16)
                pl.BlockSpec((d_in, h_p), lambda i, j: (0, 0), **res),  # W1 resident
                pl.BlockSpec((1, h_p), lambda i, j: (0, 0), **res),     # b1 resident
                w2_spec,                                                # W2
                b2_spec,                                                # b2
            ],
            out_specs=pl.BlockSpec((tb, tn), lambda i, j: (i, j)),
            scratch_shapes=[pltpu.VMEM((tb, h_p), jnp.bfloat16)],       # hidden act
            compiler_params=pltpu.CompilerParams(
                # batch axis shards across TensorCores (free ~2x on v7x);
                # output-feature axis reuses the hidden scratch -> arbitrary.
                dimension_semantics=("parallel", "arbitrary"),
                vmem_limit_bytes=vmem_limit,
            ),
        )(x_p, w1_p, b1_p, w2_p, b2_p)

    try:
        out_p = call(single_buffer_weights=True)    # single-buffer resident weights
    except Exception:
        out_p = call(single_buffer_weights=False)   # fall back to default 2-deep

    return out_p[:batch, :d_out]


def init_linear_params(key, in_features, out_features):
    """Deterministic init mimicking torch.nn.Linear default (uniform +-1/sqrt(fan_in)).
    Weight is returned already transposed to [in_features, out_features]."""
    kw, kb = jax.random.split(key)
    bound = 1.0 / math.sqrt(in_features)
    w = jax.random.uniform(
        kw, (in_features, out_features), jnp.float32, minval=-bound, maxval=bound
    )
    b = jax.random.uniform(
        kb, (1, out_features), jnp.float32, minval=-bound, maxval=bound
    )
    return w, b


if __name__ == "__main__":
    # Small shapes consistent with the module's forward.
    batch, input_dim, hidden_dim, output_dim = 8, 32, 64, 16

    key = jax.random.PRNGKey(0)
    kx, k1, k2 = jax.random.split(key, 3)

    x = jax.random.normal(kx, (batch, input_dim), jnp.float32)
    w1, b1 = init_linear_params(k1, input_dim, hidden_dim)
    w2, b2 = init_linear_params(k2, hidden_dim, output_dim)

    out = jax.block_until_ready(mlp_pallas(x, w1, b1, w2, b2))

    # Pure-JAX f32 reference (kernel uses bf16 MXU operands -> loosened tolerance).
    ref = jnp.maximum(jnp.maximum(x @ w1 + b1, 0.0) @ w2 + b2, 0.0)
    assert out.shape == (batch, output_dim)
    assert jnp.allclose(out, ref, atol=2e-2, rtol=2e-2), "mismatch vs reference"

    print("KERNEL_OK")
</pallas_src>

<mosaic_0001>
module attributes {stable_mosaic.version = 11 : i64} {
  func.func @_mlp_kernel(%arg0: i32, %arg1: i32, %arg2: memref<16x32xbf16, #tpu.memory_space<vmem>>, %arg3: memref<32x128xbf16, #tpu.memory_space<vmem>>, %arg4: memref<1x128xf32, #tpu.memory_space<vmem>>, %arg5: memref<128x128xbf16, #tpu.memory_space<vmem>>, %arg6: memref<1x128xf32, #tpu.memory_space<vmem>>, %arg7: memref<16x128xf32, #tpu.memory_space<vmem>>, %arg8: memref<16x128xbf16, #tpu.memory_space<vmem>>) attributes {dimension_semantics = [#tpu.dimension_semantics<parallel>, #tpu.dimension_semantics<arbitrary>], iteration_bounds = array<i64: 1, 1>, scalar_prefetch = 0 : i64, scratch_operands = 1 : i64, tpu.core_type = #tpu.core_type<tc>, window_params = [{transform_indices = @transform_0, window_bounds = array<i64: 16, 32>}, {pipeline_mode = #tpu.pipeline_mode<synchronous>, transform_indices = @transform_1, window_bounds = array<i64: 32, 128>}, {pipeline_mode = #tpu.pipeline_mode<synchronous>, transform_indices = @transform_2, window_bounds = array<i64: 1, 128>}, {pipeline_mode = #tpu.pipeline_mode<synchronous>, transform_indices = @transform_3, window_bounds = array<i64: 128, 128>}, {pipeline_mode = #tpu.pipeline_mode<synchronous>, transform_indices = @transform_4, window_bounds = array<i64: 1, 128>}, {transform_indices = @transform_5, window_bounds = array<i64: 16, 128>}]} {
    %c0_i32 = arith.constant 0 : i32
    %0 = arith.cmpi eq, %arg1, %c0_i32 : i32
    %1 = arith.extui %0 : i1 to i32
    %c0_i32_0 = arith.constant 0 : i32
    %2 = arith.cmpi ne, %1, %c0_i32_0 : i32
    scf.if %2 {
      %c0_9 = arith.constant 0 : index
      %c0_10 = arith.constant 0 : index
      %12 = vector.load %arg2[%c0_9, %c0_10] : memref<16x32xbf16, #tpu.memory_space<vmem>>, vector<16x32xbf16>
      %c0_11 = arith.constant 0 : index
      %c0_12 = arith.constant 0 : index
      %13 = vector.load %arg3[%c0_11, %c0_12] : memref<32x128xbf16, #tpu.memory_space<vmem>>, vector<32x128xbf16>
      %cst_13 = arith.constant dense<0.000000e+00> : vector<16x128xf32>
      %14 = tpu.matmul %12, %13, %cst_13 {dimension_numbers = #tpu.dot_dimension_numbers<[1], [0], [0], [1], [0, 0, 1, 1], [], []>} : vector<16x32xbf16>, vector<32x128xbf16>, vector<16x128xf32> -> vector<16x128xf32>
      %c0_14 = arith.constant 0 : index
      %c0_15 = arith.constant 0 : index
      %15 = vector.load %arg4[%c0_14, %c0_15] : memref<1x128xf32, #tpu.memory_space<vmem>>, vector<1x128xf32>
      %16 = vector.broadcast %15 : vector<1x128xf32> to vector<16x128xf32>
      %17 = arith.addf %14, %16 : vector<16x128xf32>
      %cst_16 = arith.constant 0.000000e+00 : f32
      %18 = vector.broadcast %cst_16 : f32 to vector<16x128xf32>
      %19 = arith.maximumf %17, %18 : vector<16x128xf32>
      %20 = arith.truncf %19 : vector<16x128xf32> to vector<16x128xbf16>
      %c0_17 = arith.constant 0 : index
      %c0_18 = arith.constant 0 : index
      %21 = vector.load %arg8[%c0_17, %c0_18] : memref<16x128xbf16, #tpu.memory_space<vmem>>, vector<16x128xbf16>
      tpu.vector_store %arg8[%c0_17, %c0_18], %20 {strides = array<i32>} : memref<16x128xbf16, #tpu.memory_space<vmem>>, vector<16x128xbf16>,
    } else {
    }
    %c0 = arith.constant 0 : index
    %c0_1 = arith.constant 0 : index
    %3 = vector.load %arg8[%c0, %c0_1] : memref<16x128xbf16, #tpu.memory_space<vmem>>, vector<16x128xbf16>
    %c0_2 = arith.constant 0 : index
    %c0_3 = arith.constant 0 : index
    %4 = vector.load %arg5[%c0_2, %c0_3] : memref<128x128xbf16, #tpu.memory_space<vmem>>, vector<128x128xbf16>
    %cst = arith.constant dense<0.000000e+00> : vector<16x128xf32>
    %5 = tpu.matmul %3, %4, %cst {dimension_numbers = #tpu.dot_dimension_numbers<[1], [0], [0], [1], [0, 0, 1, 1], [], []>} : vector<16x128xbf16>, vector<128x128xbf16>, vector<16x128xf32> -> vector<16x128xf32>
    %c0_4 = arith.constant 0 : index
    %c0_5 = arith.constant 0 : index
    %6 = vector.load %arg6[%c0_4, %c0_5] : memref<1x128xf32, #tpu.memory_space<vmem>>, vector<1x128xf32>
    %7 = vector.broadcast %6 : vector<1x128xf32> to vector<16x128xf32>
    %8 = arith.addf %5, %7 : vector<16x128xf32>
    %cst_6 = arith.constant 0.000000e+00 : f32
    %9 = vector.broadcast %cst_6 : f32 to vector<16x128xf32>
    %10 = arith.maximumf %8, %9 : vector<16x128xf32>
    %c0_7 = arith.constant 0 : index
    %c0_8 = arith.constant 0 : index
    %11 = vector.load %arg7[%c0_7, %c0_8] : memref<16x128xf32, #tpu.memory_space<vmem>>, vector<16x128xf32>
    tpu.vector_store %arg7[%c0_7, %c0_8], %10 {strides = array<i32>} : memref<16x128xf32, #tpu.memory_space<vmem>>, vector<16x128xf32>,
    return
  }
  func.func @transform_0(%arg0: i32, %arg1: i32) -> (i32, i32) {
    %c0_i32 = arith.constant 0 : i32
    %c0_i32_0 = arith.constant 0 : i32
    return %arg0, %c0_i32 : i32, i32
  }
  func.func @transform_1(%arg0: i32, %arg1: i32) -> (i32, i32) {
    %c0_i32 = arith.constant 0 : i32
    %c0_i32_0 = arith.constant 0 : i32
    %c0_i32_1 = arith.constant 0 : i32
    return %c0_i32, %c0_i32_0 : i32, i32
  }
  func.func @transform_2(%arg0: i32, %arg1: i32) -> (i32, i32) {
    %c0_i32 = arith.constant 0 : i32
    %c0_i32_0 = arith.constant 0 : i32
    %c0_i32_1 = arith.constant 0 : i32
    return %c0_i32, %c0_i32_0 : i32, i32
  }
  func.func @transform_3(%arg0: i32, %arg1: i32) -> (i32, i32) {
    %c0_i32 = arith.constant 0 : i32
    %c0_i32_0 = arith.constant 0 : i32
    %c0_i32_1 = arith.constant 0 : i32
    return %c0_i32, %c0_i32_0 : i32, i32
  }
  func.func @transform_4(%arg0: i32, %arg1: i32) -> (i32, i32) {
    %c0_i32 = arith.constant 0 : i32
    %c0_i32_0 = arith.constant 0 : i32
    %c0_i32_1 = arith.constant 0 : i32
    return %c0_i32, %c0_i32_0 : i32, i32
  }
  func.func @transform_5(%arg0: i32, %arg1: i32) -> (i32, i32) {
    %c0_i32 = arith.constant 0 : i32
    return %arg0, %arg1 : i32, i32
  }
}

module attributes {stable_mosaic.version = 11 : i64} {
  func.func @_mlp_kernel(%arg0: i32, %arg1: i32, %arg2: memref<16x32xbf16, #tpu.memory_space<vmem>>, %arg3: memref<32x128xbf16, #tpu.memory_space<vmem>>, %arg4: memref<1x128xf32, #tpu.memory_space<vmem>>, %arg5: memref<128x128xbf16, #tpu.memory_space<vmem>>, %arg6: memref<1x128xf32, #tpu.memory_space<vmem>>, %arg7: memref<16x128xf32, #tpu.memory_space<vmem>>, %arg8: memref<16x128xbf16, #tpu.memory_space<vmem>>) attributes {dimension_semantics = [#tpu.dimension_semantics<parallel>, #tpu.dimension_semantics<arbitrary>], iteration_bounds = array<i64: 1, 1>, scalar_prefetch = 0 : i64, scratch_operands = 1 : i64, tpu.core_type = #tpu.core_type<tc>, window_params = [{transform_indices = @transform_0, window_bounds = array<i64: 16, 32>}, {pipeline_mode = #tpu.pipeline_mode<synchronous>, transform_indices = @transform_1, window_bounds = array<i64: 32, 128>}, {pipeline_mode = #tpu.pipeline_mode<synchronous>, transform_indices = @transform_2, window_bounds = array<i64: 1, 128>}, {pipeline_mode = #tpu.pipeline_mode<synchronous>, transform_indices = @transform_3, window_bounds = array<i64: 128, 128>}, {pipeline_mode = #tpu.pipeline_mode<synchronous>, transform_indices = @transform_4, window_bounds = array<i64: 1, 128>}, {transform_indices = @transform_5, window_bounds = array<i64: 16, 128>}]} {
    %c0_i32 = arith.constant 0 : i32
    %0 = arith.cmpi eq, %arg1, %c0_i32 : i32
    %1 = arith.extui %0 : i1 to i32
    %c0_i32_0 = arith.constant 0 : i32
    %2 = arith.cmpi ne, %1, %c0_i32_0 : i32
    scf.if %2 {
      %c0_9 = arith.constant 0 : index
      %c0_10 = arith.constant 0 : index
      %12 = vector.load %arg2[%c0_9, %c0_10] : memref<16x32xbf16, #tpu.memory_space<vmem>>, vector<16x32xbf16>
      %c0_11 = arith.constant 0 : index
      %c0_12 = arith.constant 0 : index
      %13 = vector.load %arg3[%c0_11, %c0_12] : memref<32x128xbf16, #tpu.memory_space<vmem>>, vector<32x128xbf16>
      %cst_13 = arith.constant dense<0.000000e+00> : vector<16x128xf32>
      %14 = tpu.matmul %12, %13, %cst_13 {dimension_numbers = #tpu.dot_dimension_numbers<[1], [0], [0], [1], [0, 0, 1, 1], [], []>} : vector<16x32xbf16>, vector<32x128xbf16>, vector<16x128xf32> -> vector<16x128xf32>
      %c0_14 = arith.constant 0 : index
      %c0_15 = arith.constant 0 : index
      %15 = vector.load %arg4[%c0_14, %c0_15] : memref<1x128xf32, #tpu.memory_space<vmem>>, vector<1x128xf32>
      %16 = vector.broadcast %15 : vector<1x128xf32> to vector<16x128xf32>
      %17 = arith.addf %14, %16 : vector<16x128xf32>
      %cst_16 = arith.constant 0.000000e+00 : f32
      %18 = vector.broadcast %cst_16 : f32 to vector<16x128xf32>
      %19 = arith.maximumf %17, %18 : vector<16x128xf32>
      %20 = arith.truncf %19 : vector<16x128xf32> to vector<16x128xbf16>
      %c0_17 = arith.constant 0 : index
      %c0_18 = arith.constant 0 : index
      %21 = vector.load %arg8[%c0_17, %c0_18] : memref<16x128xbf16, #tpu.memory_space<vmem>>, vector<16x128xbf16>
      tpu.vector_store %arg8[%c0_17, %c0_18], %20 {strides = array<i32>} : memref<16x128xbf16, #tpu.memory_space<vmem>>, vector<16x128xbf16>,
    } else {
    }
    %c0 = arith.constant 0 : index
    %c0_1 = arith.constant 0 : index
    %3 = vector.load %arg8[%c0, %c0_1] : memref<16x128xbf16, #tpu.memory_space<vmem>>, vector<16x128xbf16>
    %c0_2 = arith.constant 0 : index
    %c0_3 = arith.constant 0 : index
    %4 = vector.load %arg5[%c0_2, %c0_3] : memref<128x128xbf16, #tpu.memory_space<vmem>>, vector<128x128xbf16>
    %cst = arith.constant dense<0.000000e+00> : vector<16x128xf32>
    %5 = tpu.matmul %3, %4, %cst {dimension_numbers = #tpu.dot_dimension_numbers<[1], [0], [0], [1], [0, 0, 1, 1], [], []>} : vector<16x128xbf16>, vector<128x128xbf16>, vector<16x128xf32> -> vector<16x128xf32>
    %c0_4 = arith.constant 0 : index
    %c0_5 = arith.constant 0 : index
    %6 = vector.load %arg6[%c0_4, %c0_5] : memref<1x128xf32, #tpu.memory_space<vmem>>, vector<1x128xf32>
    %7 = vector.broadcast %6 : vector<1x128xf32> to vector<16x128xf32>
    %8 = arith.addf %5, %7 : vector<16x128xf32>
    %cst_6 = arith.constant 0.000000e+00 : f32
    %9 = vector.broadcast %cst_6 : f32 to vector<16x128xf32>
    %10 = arith.maximumf %8, %9 : vector<16x128xf32>
    %c0_7 = arith.constant 0 : index
    %c0_8 = arith.constant 0 : index
    %11 = vector.load %arg7[%c0_7, %c0_8] : memref<16x128xf32, #tpu.memory_space<vmem>>, vector<16x128xf32>
    tpu.vector_store %arg7[%c0_7, %c0_8], %10 {strides = array<i32>} : memref<16x128xf32, #tpu.memory_space<vmem>>, vector<16x128xf32>,
    return
  }
  func.func @transform_0(%arg0: i32, %arg1: i32) -> (i32, i32) {
    %c0_i32 = arith.constant 0 : i32
    %c0_i32_0 = arith.constant 0 : i32
    return %arg0, %c0_i32 : i32, i32
  }
  func.func @transform_1(%arg0: i32, %arg1: i32) -> (i32, i32) {
    %c0_i32 = arith.constant 0 : i32
    %c0_i32_0 = arith.constant 0 : i32
    %c0_i32_1 = arith.constant 0 : i32
    return %c0_i32, %c0_i32_0 : i32, i32
  }
  func.func @transform_2(%arg0: i32, %arg1: i32) -> (i32, i32) {
    %c0_i32 = arith.constant 0 : i32
    %c0_i32_0 = arith.constant 0 : i32
    %c0_i32_1 = arith.constant 0 : i32
    return %c0_i32, %c0_i32_0 : i32, i32
  }
  func.func @transform_3(%arg0: i32, %arg1: i32) -> (i32, i32) {
    %c0_i32 = arith.constant 0 : i32
    %c0_i32_0 = arith.constant 0 : i32
    %c0_i32_1 = arith.constant 0 : i32
    return %c0_i32, %c0_i32_0 : i32, i32
  }
  func.func @transform_4(%arg0: i32, %arg1: i32) -> (i32, i32) {
    %c0_i32 = arith.constant 0 : i32
    %c0_i32_0 = arith.constant 0 : i32
    %c0_i32_1 = arith.constant 0 : i32
    return %c0_i32, %c0_i32_0 : i32, i32
  }
  func.func @transform_5(%arg0: i32, %arg1: i32) -> (i32, i32) {
    %c0_i32 = arith.constant 0 : i32
    return %arg0, %arg1 : i32, i32
  }
}

</mosaic_0001>

<bundles_post_ra>
// kernel: tpu_custom_call.1
= control target key start
LH: loop header
LB: loop body
LE: loop exit
PB: predicated region body
PF: predicated region fallthrough
CT: control target
= control target key end

     0   :  { %10 = vsyncpa [#allocation4], 0  ;;  %s560_s0 = inlined_call_operand.hbm [shape: bf16[16,32], index: 0, kind: input, shape index: {}]   ;;  %s561_s1 = inlined_call_operand.hbm [shape: bf16[32,128], index: 1, kind: input, shape index: {}]   ;;  %s562_s2 = inlined_call_operand.vmem [shape: f32[1,128], index: 2, kind: input, shape index: {}]   ;;  %s563_s3 = inlined_call_operand.hbm [shape: bf16[128,128], index: 3, kind: input, shape index: {}]   ;;  %s564_s4 = inlined_call_operand.vmem [shape: f32[1,128], index: 4, kind: input, shape index: {}]   ;;  %s565_s5 = inlined_call_operand.hbm [shape: f32[16,128], index: 5, kind: output, shape index: {}]  }
   0x1   :  { %11 = vsyncpa [#allocation7], 0 }
   0x2   :  { %12 = vsyncpa [#allocation5], 0  ;;  %s450_s18 = smov [#allocation6]   ;;  %s451_s20 = smov [#allocation3]  }
   0x3   :  { %s30_s19 = sshll.u32 %s450_s18, 4  ;;  %s18_s21 = sshll.u32 %s451_s20, 4  ;;  %s31_s19 = int_to_ptr.vmem [resolvable:$true] %s30_s19  ;;  %s490_s21 = int_to_ptr.vmem [resolvable:$true] %s18_s21 }
   0x4   :  { %s356_s24 = scalar_lea.hbm %s561_s1, 256 }
   0x5   :  { %p357_p0 = scmp.ne.s32.totalorder %s561_s1, %s356_s24  ;;  %p360_p1 = scmp.lt.u32.totalorder %s356_s24, %s561_s1 }
   0x7   :  { %p362_p2 = pnand %p360_p1, %p357_p0 }
   0x9   :  { %365 = shalt.err (!%p362_p2)
}
   0xa   :  { %s366_s29 = scalar_lea.vmem %s31_s19, 256  ;;  %p371_p4 = scmp.lt.s32.totalorder %s31_s19, %s31_s19 }
   0xb   :  { %p367_p3 = scmp.ne.s32.totalorder %s31_s19, %s366_s29  ;;  %p372_p5 = scmp.lt.s32.totalorder %s366_s29, %s366_s29 }
   0xd   :  { %p373_p6 = por %p372_p5, %p371_p4 }
   0xf   :  { %p374_p7 = pnand %p373_p6, %p367_p3 }
  0x11   :  { %377 = shalt.err (!%p374_p7)
}
  0x12   :  { %s452_s30 = smov 64   ;;  %s453_s6 = smov 4  }
  0x13   :  { %36 = dma.hbm_to_vmem [thread:$0]  %s561_s1, 256, %s31_s19, [#allocation7], %s452_s30, %s452_s30, %s453_s6  }
  0x14   :  { %s378_s11 = scalar_lea.hbm %s560_s0, 128 }
  0x15   :  { %p379_p8 = scmp.ne.s32.totalorder %s560_s0, %s378_s11  ;;  %p382_p9 = scmp.lt.u32.totalorder %s378_s11, %s560_s0 }
  0x17   :  { %p384_p10 = pnand %p382_p9, %p379_p8 }
  0x19   :  { %387 = shalt.err (!%p384_p10)
}
  0x1a   :  { %s388_s16 = scalar_lea.vmem %s490_s21, 128  ;;  %p393_p12 = scmp.lt.s32.totalorder %s490_s21, %s490_s21 }
  0x1b   :  { %p389_p11 = scmp.ne.s32.totalorder %s490_s21, %s388_s16  ;;  %p394_p13 = scmp.lt.s32.totalorder %s388_s16, %s388_s16 }
  0x1d   :  { %p395_p0 = por %p394_p13, %p393_p12 }
  0x1f   :  { %p396_p1 = pnand %p395_p0, %p389_p11 }
  0x21   :  { %399 = shalt.err (!%p396_p1)
}
  0x22   :  { %24 = dma.hbm_to_vmem [thread:$0]  %s560_s0, 128, %s490_s21, [#allocation4], %s452_s30, %s452_s30, %s453_s6  }
  0x23   :  { %s454_s18 = smov [#allocation8]   ;;  %s400_s23 = scalar_lea.hbm %s563_s3, 1024 }
  0x24   :  { %s44_s19 = sshll.u32 %s454_s18, 4  ;;  %p401_p2 = scmp.ne.s32.totalorder %s563_s3, %s400_s23  ;;  %s45_s19 = int_to_ptr.vmem [resolvable:$true] %s44_s19 }
  0x25   :  { %p404_p3 = scmp.lt.u32.totalorder %s400_s23, %s563_s3 }
  0x27   :  { %p406_p4 = pnand %p404_p3, %p401_p2 }
  0x29   :  { %409 = shalt.err (!%p406_p4)
}
  0x2a   :  { %s410_s28 = scalar_lea.vmem %s45_s19, 1024  ;;  %p415_p6 = scmp.lt.s32.totalorder %s45_s19, %s45_s19 }
  0x2b   :  { %p411_p5 = scmp.ne.s32.totalorder %s45_s19, %s410_s28  ;;  %p416_p7 = scmp.lt.s32.totalorder %s410_s28, %s410_s28 }
  0x2d   :  { %p417_p8 = por %p416_p7, %p415_p6 }
  0x2f   :  { %p418_p9 = pnand %p417_p8, %p411_p5 }
  0x31   :  { %421 = shalt.err (!%p418_p9)
}
  0x32   :  { %50 = dma.hbm_to_vmem [thread:$0]  %s563_s3, 1024, %s45_s19, [#allocation7], %s452_s30, %s452_s30, %s453_s6  }
  0x33   :  { %444 = dma.done.wait [#allocation4], 128  }
  0x34   :  { %445 = vsyncadd [#allocation4], 4294967168 }
  0x35   :  { %446 = dma.done.wait [#allocation7], 1280  }
  0x36   :  { %447 = vsyncadd [#allocation7], 4294966016  ;;  %v455_v0 = vmov 0.0   ;;  %vm456_vm0 = vmmov 0   ;;  %v345_v1 = vld [vmem:[#allocation6] sm:$0xff]   ;;  %v346_v2 = vld [vmem:[#allocation6 + $0x8] sm:$0xff]  }
  0x37   :  { %307 = vmatprep.subr.bf16.mxu0 %v455_v0  ;;  %311 = vmatprep.mubr.msk.bf16.mxu0 %vm456_vm0, %v455_v0  ;;  %v348_v3 = vld [vmem:[#allocation8] sm:$0xff]   ;;  %v347_v4 = vld [vmem:[#allocation3] sm:$0xff]   ;;  %vm97_vm1 = vcmask 261120   ;;  %v350_v6 = vld [vmem:[#allocation8 + $0x10] sm:$0xff]   ;;  %s457_s7 = smov [#allocation9]  }
  0x38   :  { %315 = vmatprep.subr.bf16.mxu1 %v455_v0  ;;  %331 = vmatprep.mubr.msk.bf16.mxu1 %vm456_vm0, %v455_v0  ;;  %v349_v5 = vld [vmem:[#allocation8 + $0x8] sm:$0xff]   ;;  %v351_v7 = vld [vmem:[#allocation8 + $0x18] sm:$0xff]   ;;  %v352_v8 = vld [vmem:[#allocation8 + $0x20] sm:$0xff]   ;;  %s268_s8 = sshll.u32 %s457_s7, 4  ;;  %s269_s8 = int_to_ptr.vmem [resolvable:$true] %s268_s8 }
  0x39   :  { %308 = vmatpush3.bf16.msra.mxu0 %v345_v1  ;;  %316 = vmatpush3.bf16.msra.mxu1 %v348_v3  ;;  %v353_v9 = vld [vmem:[#allocation8 + $0x28] sm:$0xff]   ;;  %v354_v10 = vld [vmem:[#allocation8 + $0x30] sm:$0xff]   ;;  %v355_v11 = vld [vmem:[#allocation8 + $0x38] sm:$0xff]   ;;  %p427_p11 = scmp.lt.s32.totalorder %s269_s8, %s269_s8 }
  0x3a   :  { %309 = vmatprep.subr.bf16.mxu0 %v455_v0  ;;  %317 = vmatprep.subr.bf16.mxu1 %v455_v0  ;;  %v281_v12 = vld [vmem:[%s562_s2] ss:$0 sm:$0xff]  ;;  %s422_s2 = scalar_lea.vmem %s269_s8, 256 }
  0x3b   :  { %v286_v22 = vld [vmem:[%s564_s4] ss:$0 sm:$0xff]  ;;  %p423_p10 = scmp.ne.s32.totalorder %s269_s8, %s422_s2  ;;  %p428_p12 = scmp.lt.s32.totalorder %s422_s2, %s422_s2 }
  0x3d   :  { %310 = vmatpush3.bf16.msra.mxu0 %v346_v2  ;;  %318 = vmatpush3.bf16.msra.mxu1 %v349_v5  ;;  %p429_p13 = por %p428_p12, %p427_p11 }
  0x3e   :  { %319 = vmatprep.subr.bf16.mxu1 %v455_v0 }
  0x3f   :  { %p430_p0 = pnand %p429_p13, %p423_p10 }
  0x40   :  { %312 = vmatmul.mubr.msk.bf16.vlgmr.msra.gmra.mrb[0].mxu0 %vm97_vm1, %v347_v4 }
  0x41   :  { %320 = vmatpush3.bf16.msra.mxu1 %v350_v6 }
  0x42   :  { %321 = vmatprep.subr.bf16.mxu1 %v455_v0 }
  0x45   :  { %322 = vmatpush3.bf16.msra.mxu1 %v351_v7 }
  0x46   :  { %323 = vmatprep.subr.bf16.mxu1 %v455_v0 }
  0x49   :  { %324 = vmatpush3.bf16.msra.mxu1 %v352_v8 }
  0x4a   :  { %325 = vmatprep.subr.bf16.mxu1 %v455_v0 }
  0x4d   :  { %326 = vmatpush3.bf16.msra.mxu1 %v353_v9 }
  0x4e   :  { %327 = vmatprep.subr.bf16.mxu1 %v455_v0 }
  0x51   :  { %328 = vmatpush3.bf16.msra.mxu1 %v354_v10 }
  0x52   :  { %329 = vmatprep.subr.bf16.mxu1 %v455_v0 }
  0x55   :  { %330 = vmatpush3.bf16.msra.mxu1 %v355_v11 }
 0x113   :  { %v135_v13 = vpop.f32.mrb[0].mxu0 }
 0x114   :  { %v136_v14 = vadd.f32 %v281_v12, %v135_v13  ;;  %v313_v15 = vpop.f32.mrb[1].mxu0 }
 0x115   :  { %v138_v16 = vpop.f32.mrb[2].mxu0 }
 0x116   :  { %v139_v17 = vadd.f32 %v281_v12, %v138_v16  ;;  %v314_v18 = vpop.f32.mrb[3].mxu0  ;;  %v142_v19 = vmax.f32 %v136_v14, 0.0 }
 0x118   :  { %v143_v20 = vmax.f32 %v139_v17, 0.0 }
 0x11a   :  { %v144_v21 = vpack.c.bf16 %v143_v20, %v142_v19 }
 0x11c   :  { %332 = vmatmul.mubr.bf16.vlgmr.msra.gmra.mrb[0].mxu1 %v144_v21 }
 0x1ef   :  { %v252_v23 = vpop.f32.mrb[0].mxu1 }
 0x1f0   :  { %v253_v24 = vadd.f32 %v286_v22, %v252_v23  ;;  %v333_v25 = vpop.f32.mrb[1].mxu1 }
 0x1f1   :  { %v255_v26 = vpop.f32.mrb[2].mxu1 }
 0x1f2   :  { %v259_v27 = vmax.f32 %v253_v24, 0.0  ;;  %v256_v28 = vadd.f32 %v286_v22, %v255_v26  ;;  %v334_v29 = vpop.f32.mrb[3].mxu1 }
 0x1f4   :  { %261 = vst [vmem:[#allocation9] sm:$0xff] %v259_v27  ;;  %v260_v30 = vmax.f32 %v256_v28, 0.0 }
 0x1f6   :  { %262 = vst [vmem:[#allocation9 + $0x8] sm:$0xff] %v260_v30 }
 0x1f7   :  { %433 = shalt.err (!%p430_p0)
}
 0x1f8   :  { %s434_s10 = scalar_lea.hbm %s565_s5, 256 }
 0x1f9   :  { %p435_p1 = scmp.ne.s32.totalorder %s565_s5, %s434_s10  ;;  %p438_p2 = scmp.lt.u32.totalorder %s434_s10, %s565_s5 }
 0x1fb   :  { %p440_p3 = pnand %p438_p2, %p435_p1 }
 0x1fd   :  { %443 = shalt.err (!%p440_p3)
}
 0x1fe   :  { %s458_s15 = smov 128   ;;  %s459_s16 = smov 8  }
 0x1ff   :  { %274 = dma.vmem_to_hbm [thread:$0]  %s269_s8, 256, %s565_s5, [#allocation5], %s458_s15, %s458_s15, %s459_s16  }
 0x200   :  { %448 = dma.done.wait [#allocation5], 256  }
 0x201   :  { %449 = vsyncadd [#allocation5], 4294967040 }
 0x202   :  { %278 = vsyncpa [#allocation4], 1 }
 0x203   :  { %279 = vsyncpa [#allocation7], 1 }
 0x204   :  { %280 = vsyncpa [#allocation5], 1 }

// kernel: tpu_custom_call.1
= control target key start
LH: loop header
LB: loop body
LE: loop exit
PB: predicated region body
PF: predicated region fallthrough
CT: control target
= control target key end

     0   :  { %10 = vsyncpa [#allocation4], 0  ;;  %s560_s0 = inlined_call_operand.hbm [shape: bf16[16,32], index: 0, kind: input, shape index: {}]   ;;  %s561_s1 = inlined_call_operand.hbm [shape: bf16[32,128], index: 1, kind: input, shape index: {}]   ;;  %s562_s2 = inlined_call_operand.vmem [shape: f32[1,128], index: 2, kind: input, shape index: {}]   ;;  %s563_s3 = inlined_call_operand.hbm [shape: bf16[128,128], index: 3, kind: input, shape index: {}]   ;;  %s564_s4 = inlined_call_operand.vmem [shape: f32[1,128], index: 4, kind: input, shape index: {}]   ;;  %s565_s5 = inlined_call_operand.hbm [shape: f32[16,128], index: 5, kind: output, shape index: {}]  }
   0x1   :  { %11 = vsyncpa [#allocation7], 0 }
   0x2   :  { %12 = vsyncpa [#allocation5], 0  ;;  %s450_s18 = smov [#allocation6]   ;;  %s451_s20 = smov [#allocation3]  }
   0x3   :  { %s30_s19 = sshll.u32 %s450_s18, 4  ;;  %s18_s21 = sshll.u32 %s451_s20, 4  ;;  %s31_s19 = int_to_ptr.vmem [resolvable:$true] %s30_s19  ;;  %s490_s21 = int_to_ptr.vmem [resolvable:$true] %s18_s21 }
   0x4   :  { %s356_s24 = scalar_lea.hbm %s561_s1, 256 }
   0x5   :  { %p357_p0 = scmp.ne.s32.totalorder %s561_s1, %s356_s24  ;;  %p360_p1 = scmp.lt.u32.totalorder %s356_s24, %s561_s1 }
   0x7   :  { %p362_p2 = pnand %p360_p1, %p357_p0 }
   0x9   :  { %365 = shalt.err (!%p362_p2)
}
   0xa   :  { %s366_s29 = scalar_lea.vmem %s31_s19, 256  ;;  %p371_p4 = scmp.lt.s32.totalorder %s31_s19, %s31_s19 }
   0xb   :  { %p367_p3 = scmp.ne.s32.totalorder %s31_s19, %s366_s29  ;;  %p372_p5 = scmp.lt.s32.totalorder %s366_s29, %s366_s29 }
   0xd   :  { %p373_p6 = por %p372_p5, %p371_p4 }
   0xf   :  { %p374_p7 = pnand %p373_p6, %p367_p3 }
  0x11   :  { %377 = shalt.err (!%p374_p7)
}
  0x12   :  { %s452_s30 = smov 64   ;;  %s453_s6 = smov 4  }
  0x13   :  { %36 = dma.hbm_to_vmem [thread:$0]  %s561_s1, 256, %s31_s19, [#allocation7], %s452_s30, %s452_s30, %s453_s6  }
  0x14   :  { %s378_s11 = scalar_lea.hbm %s560_s0, 128 }
  0x15   :  { %p379_p8 = scmp.ne.s32.totalorder %s560_s0, %s378_s11  ;;  %p382_p9 = scmp.lt.u32.totalorder %s378_s11, %s560_s0 }
  0x17   :  { %p384_p10 = pnand %p382_p9, %p379_p8 }
  0x19   :  { %387 = shalt.err (!%p384_p10)
}
  0x1a   :  { %s388_s16 = scalar_lea.vmem %s490_s21, 128  ;;  %p393_p12 = scmp.lt.s32.totalorder %s490_s21, %s490_s21 }
  0x1b   :  { %p389_p11 = scmp.ne.s32.totalorder %s490_s21, %s388_s16  ;;  %p394_p13 = scmp.lt.s32.totalorder %s388_s16, %s388_s16 }
  0x1d   :  { %p395_p0 = por %p394_p13, %p393_p12 }
  0x1f   :  { %p396_p1 = pnand %p395_p0, %p389_p11 }
  0x21   :  { %399 = shalt.err (!%p396_p1)
}
  0x22   :  { %24 = dma.hbm_to_vmem [thread:$0]  %s560_s0, 128, %s490_s21, [#allocation4], %s452_s30, %s452_s30, %s453_s6  }
  0x23   :  { %s454_s18 = smov [#allocation8]   ;;  %s400_s23 = scalar_lea.hbm %s563_s3, 1024 }
  0x24   :  { %s44_s19 = sshll.u32 %s454_s18, 4  ;;  %p401_p2 = scmp.ne.s32.totalorder %s563_s3, %s400_s23  ;;  %s45_s19 = int_to_ptr.vmem [resolvable:$true] %s44_s19 }
  0x25   :  { %p404_p3 = scmp.lt.u32.totalorder %s400_s23, %s563_s3 }
  0x27   :  { %p406_p4 = pnand %p404_p3, %p401_p2 }
  0x29   :  { %409 = shalt.err (!%p406_p4)
}
  0x2a   :  { %s410_s28 = scalar_lea.vmem %s45_s19, 1024  ;;  %p415_p6 = scmp.lt.s32.totalorder %s45_s19, %s45_s19 }
  0x2b   :  { %p411_p5 = scmp.ne.s32.totalorder %s45_s19, %s410_s28  ;;  %p416_p7 = scmp.lt.s32.totalorder %s410_s28, %s410_s28 }
  0x2d   :  { %p417_p8 = por %p416_p7, %p415_p6 }
  0x2f   :  { %p418_p9 = pnand %p417_p8, %p411_p5 }
  0x31   :  { %421 = shalt.err (!%p418_p9)
}
  0x32   :  { %50 = dma.hbm_to_vmem [thread:$0]  %s563_s3, 1024, %s45_s19, [#allocation7], %s452_s30, %s452_s30, %s453_s6  }
  0x33   :  { %444 = dma.done.wait [#allocation4], 128  }
  0x34   :  { %445 = vsyncadd [#allocation4], 4294967168 }
  0x35   :  { %446 = dma.done.wait [#allocation7], 1280  }
  0x36   :  { %447 = vsyncadd [#allocation7], 4294966016  ;;  %v455_v0 = vmov 0.0   ;;  %vm456_vm0 = vmmov 0   ;;  %v345_v1 = vld [vmem:[#allocation6] sm:$0xff]   ;;  %v346_v2 = vld [vmem:[#allocation6 + $0x8] sm:$0xff]  }
  0x37   :  { %307 = vmatprep.subr.bf16.mxu0 %v455_v0  ;;  %311 = vmatprep.mubr.msk.bf16.mxu0 %vm456_vm0, %v455_v0  ;;  %v348_v3 = vld [vmem:[#allocation8] sm:$0xff]   ;;  %v347_v4 = vld [vmem:[#allocation3] sm:$0xff]   ;;  %vm97_vm1 = vcmask 261120   ;;  %v350_v6 = vld [vmem:[#allocation8 + $0x10] sm:$0xff]   ;;  %s457_s7 = smov [#allocation9]  }
  0x38   :  { %315 = vmatprep.subr.bf16.mxu1 %v455_v0  ;;  %331 = vmatprep.mubr.msk.bf16.mxu1 %vm456_vm0, %v455_v0  ;;  %v349_v5 = vld [vmem:[#allocation8 + $0x8] sm:$0xff]   ;;  %v351_v7 = vld [vmem:[#allocation8 + $0x18] sm:$0xff]   ;;  %v352_v8 = vld [vmem:[#allocation8 + $0x20] sm:$0xff]   ;;  %s268_s8 = sshll.u32 %s457_s7, 4  ;;  %s269_s8 = int_to_ptr.vmem [resolvable:$true] %s268_s8 }
  0x39   :  { %308 = vmatpush3.bf16.msra.mxu0 %v345_v1  ;;  %316 = vmatpush3.bf16.msra.mxu1 %v348_v3  ;;  %v353_v9 = vld [vmem:[#allocation8 + $0x28] sm:$0xff]   ;;  %v354_v10 = vld [vmem:[#allocation8 + $0x30] sm:$0xff]   ;;  %v355_v11 = vld [vmem:[#allocation8 + $0x38] sm:$0xff]   ;;  %p427_p11 = scmp.lt.s32.totalorder %s269_s8, %s269_s8 }
  0x3a   :  { %309 = vmatprep.subr.bf16.mxu0 %v455_v0  ;;  %317 = vmatprep.subr.bf16.mxu1 %v455_v0  ;;  %v281_v12 = vld [vmem:[%s562_s2] ss:$0 sm:$0xff]  ;;  %s422_s2 = scalar_lea.vmem %s269_s8, 256 }
  0x3b   :  { %v286_v22 = vld [vmem:[%s564_s4] ss:$0 sm:$0xff]  ;;  %p423_p10 = scmp.ne.s32.totalorder %s269_s8, %s422_s2  ;;  %p428_p12 = scmp.lt.s32.totalorder %s422_s2, %s422_s2 }
  0x3d   :  { %310 = vmatpush3.bf16.msra.mxu0 %v346_v2  ;;  %318 = vmatpush3.bf16.msra.mxu1 %v349_v5  ;;  %p429_p13 = por %p428_p12, %p427_p11 }
  0x3e   :  { %319 = vmatprep.subr.bf16.mxu1 %v455_v0 }
  0x3f   :  { %p430_p0 = pnand %p429_p13, %p423_p10 }
  0x40   :  { %312 = vmatmul.mubr.msk.bf16.vlgmr.msra.gmra.mrb[0].mxu0 %vm97_vm1, %v347_v4 }
  0x41   :  { %320 = vmatpush3.bf16.msra.mxu1 %v350_v6 }
  0x42   :  { %321 = vmatprep.subr.bf16.mxu1 %v455_v0 }
  0x45   :  { %322 = vmatpush3.bf16.msra.mxu1 %v351_v7 }
  0x46   :  { %323 = vmatprep.subr.bf16.mxu1 %v455_v0 }
  0x49   :  { %324 = vmatpush3.bf16.msra.mxu1 %v352_v8 }
  0x4a   :  { %325 = vmatprep.subr.bf16.mxu1 %v455_v0 }
  0x4d   :  { %326 = vmatpush3.bf16.msra.mxu1 %v353_v9 }
  0x4e   :  { %327 = vmatprep.subr.bf16.mxu1 %v455_v0 }
  0x51   :  { %328 = vmatpush3.bf16.msra.mxu1 %v354_v10 }
  0x52   :  { %329 = vmatprep.subr.bf16.mxu1 %v455_v0 }
  0x55   :  { %330 = vmatpush3.bf16.msra.mxu1 %v355_v11 }
 0x113   :  { %v135_v13 = vpop.f32.mrb[0].mxu0 }
 0x114   :  { %v136_v14 = vadd.f32 %v281_v12, %v135_v13  ;;  %v313_v15 = vpop.f32.mrb[1].mxu0 }
 0x115   :  { %v138_v16 = vpop.f32.mrb[2].mxu0 }
 0x116   :  { %v139_v17 = vadd.f32 %v281_v12, %v138_v16  ;;  %v314_v18 = vpop.f32.mrb[3].mxu0  ;;  %v142_v19 = vmax.f32 %v136_v14, 0.0 }
 0x118   :  { %v143_v20 = vmax.f32 %v139_v17, 0.0 }
 0x11a   :  { %v144_v21 = vpack.c.bf16 %v143_v20, %v142_v19 }
 0x11c   :  { %332 = vmatmul.mubr.bf16.vlgmr.msra.gmra.mrb[0].mxu1 %v144_v21 }
 0x1ef   :  { %v252_v23 = vpop.f32.mrb[0].mxu1 }
 0x1f0   :  { %v253_v24 = vadd.f32 %v286_v22, %v252_v23  ;;  %v333_v25 = vpop.f32.mrb[1].mxu1 }
 0x1f1   :  { %v255_v26 = vpop.f32.mrb[2].mxu1 }
 0x1f2   :  { %v259_v27 = vmax.f32 %v253_v24, 0.0  ;;  %v256_v28 = vadd.f32 %v286_v22, %v255_v26  ;;  %v334_v29 = vpop.f32.mrb[3].mxu1 }
 0x1f4   :  { %261 = vst [vmem:[#allocation9] sm:$0xff] %v259_v27  ;;  %v260_v30 = vmax.f32 %v256_v28, 0.0 }
 0x1f6   :  { %262 = vst [vmem:[#allocation9 + $0x8] sm:$0xff] %v260_v30 }
 0x1f7   :  { %433 = shalt.err (!%p430_p0)
}
 0x1f8   :  { %s434_s10 = scalar_lea.hbm %s565_s5, 256 }
 0x1f9   :  { %p435_p1 = scmp.ne.s32.totalorder %s565_s5, %s434_s10  ;;  %p438_p2 = scmp.lt.u32.totalorder %s434_s10, %s565_s5 }
 0x1fb   :  { %p440_p3 = pnand %p438_p2, %p435_p1 }
 0x1fd   :  { %443 = shalt.err (!%p440_p3)
}
 0x1fe   :  { %s458_s15 = smov 128   ;;  %s459_s16 = smov 8  }
 0x1ff   :  { %274 = dma.vmem_to_hbm [thread:$0]  %s269_s8, 256, %s565_s5, [#allocation5], %s458_s15, %s458_s15, %s459_s16  }
 0x200   :  { %448 = dma.done.wait [#allocation5], 256  }
 0x201   :  { %449 = vsyncadd [#allocation5], 4294967040 }
 0x202   :  { %278 = vsyncpa [#allocation4], 1 }
 0x203   :  { %279 = vsyncpa [#allocation7], 1 }
 0x204   :  { %280 = vsyncpa [#allocation5], 1 }

</bundles_post_ra>
